<compile_context>
chip_gen: v6e
topology: v6e:2x2x1
jax: 0.10.0
libtpu: 0.0.40
codegen_flags: <defaults>
</compile_context>

<pallas_src>
import functools

import jax
import jax.numpy as jnp
from jax.experimental import pallas as pl
from jax.experimental.pallas import tpu as pltpu


INV_SQRT2 = 0.7071067811865476      # 1/sqrt(2)
INV_SQRT_2PI = 0.3989422804014327   # 1/sqrt(2*pi)

_BF16 = jnp.bfloat16
_F32 = jnp.float32


def _suq_mlp_kernel(xm_ref, xv_ref,
                    wfc_ref, bfc_ref,
                    wpr_ref, bpr_ref,
                    om_ref, ov_ref):
    h = pl.program_id(1)                                  # hidden-dim tile index

    # Resident f32 output accumulators (same block index across the H axis):
    # initialize once, then accumulate on the straight-line (branch-free) path.
    @pl.when(h == 0)
    def _init():
        om_ref[...] = jnp.broadcast_to(bpr_ref[...], om_ref.shape)
        ov_ref[...] = jnp.zeros_like(ov_ref)

    xm = xm_ref[...]                                      # [TM, D]  bf16
    xv = xv_ref[...]                                      # [TM, D]  bf16
    wfc = wfc_ref[...]                                    # [D, TH]  bf16

    # --- c_fc linear: mean uses W, variance uses W^2 (squared on the tile) ---
    h_mean = jnp.dot(xm, wfc,
                     preferred_element_type=jnp.float32) + bfc_ref[...]   # [TM, TH] f32
    h_var = jnp.dot(xv, wfc * wfc,
                    preferred_element_type=jnp.float32)                   # [TM, TH] f32

    # --- exact GELU mean + first-order Taylor variance propagation (f32) ---
    cdf = 0.5 * (1.0 + jax.lax.erf(h_mean * INV_SQRT2))   # Phi(h_mean)
    a_mean = h_mean * cdf                                 # gelu(h_mean)
    pdf = jnp.exp(-0.5 * h_mean * h_mean) * INV_SQRT_2PI  # phi(h_mean)
    nabla = cdf + h_mean * pdf                            # gelu'(h_mean)
    a_var = nabla * nabla * h_var

    # --- c_proj partial sums for this H tile, accumulated into resident f32 ---
    wpr = wpr_ref[...]                                    # [TH, D]  bf16
    om_ref[...] += jnp.dot(a_mean.astype(wpr.dtype), wpr,
                           preferred_element_type=jnp.float32)
    ov_ref[...] += jnp.dot(a_var.astype(wpr.dtype), wpr * wpr,
                           preferred_element_type=jnp.float32)


def _round_up(x, m):
    return (x + m - 1) // m * m


_VMEM_CAPACITY = None


def _vmem_capacity_bytes():
    """Per-TensorCore VMEM capacity; conservative 64 MiB (v7x) fallback."""
    global _VMEM_CAPACITY
    if _VMEM_CAPACITY is None:
        try:
            _VMEM_CAPACITY = int(pltpu.get_tpu_info().vmem_capacity_bytes)
        except Exception:
            _VMEM_CAPACITY = 64 * 2**20
    return _VMEM_CAPACITY


def _vmem_estimate(tm, th, d):
    """Rough per-kernel VMEM working set in bytes (double-buffered I/O)."""
    return (2 * 2 * tm * d * 2           # x_mean / x_var bf16 tiles
            + 2 * 2 * d * th * 2         # W_fc^T + W_proj^T bf16 tiles
            + 2 * d * th * 2             # in-kernel squared-weight bf16 temporaries
            + 2 * 2 * tm * d * 4         # resident f32 out_mean / out_var tiles
            + 10 * tm * th * 4           # f32 GELU intermediates + bf16 casts
            + 2 * (8 * th + 8 * d) * 4)  # bias tiles (sublane padded)


def _plan_tiles(m, d, h_pad, tile_m, tile_h):
    """Pick (tm, th, vmem_limit) honouring (8,128) rules + per-generation VMEM."""
    budget = max(32 * 2**20,
                 min(100 * 2**20, _vmem_capacity_bytes() - 14 * 2**20))

    # Hidden (lane) tile: multiple of 128 that divides H_pad, near the request.
    th = min(_round_up(tile_h, 128), h_pad)
    while h_pad % th:
        th -= 128

    # Row (sublane) tile: multiple of 8; guarantee >= 2 row tiles when M allows
    # so the "parallel" M axis can shard across both v7x TensorCores.
    tm = min(_round_up(tile_m, 8), _round_up(m, 8))
    if _round_up(m, tm) == tm and m > 8:
        tm = _round_up(-(-m // 2), 8)

    # Shrink the larger tile until the working set fits this generation's VMEM.
    while _vmem_estimate(tm, th, d) > budget:
        can_th = th > 128 and (th // 2) % 128 == 0 and h_pad % (th // 2) == 0
        can_tm = tm > 128
        if can_th and (th >= tm or not can_tm):
            th //= 2
        elif can_tm:
            tm = _round_up(tm // 2, 8)
        else:
            break

    vmem_limit = int(min(budget,
                         max(32 * 2**20,
                             1.5 * _vmem_estimate(tm, th, d) + 8 * 2**20)))
    return tm, th, vmem_limit


def prepare_suq_mlp_params(w_fc, b_fc, w_proj, b_proj):
    """One-time weight prep (hoisted out of the per-call hot path): transpose,
    zero-pad the hidden dim to a lane multiple, cast matmul operands to bf16.
    Padded hidden units contribute exactly zero to both outputs."""
    h_dim, d = w_fc.shape
    h_pad = _round_up(h_dim, 128)
    wfc_t = jnp.pad(w_fc.astype(_BF16).T, ((0, 0), (0, h_pad - h_dim)))   # [D, H_pad]
    wpr_t = jnp.pad(w_proj.astype(_BF16).T, ((0, h_pad - h_dim), (0, 0)))  # [H_pad, D]
    bfc = jnp.pad(b_fc.astype(_F32), (0, h_pad - h_dim)).reshape(1, h_pad)
    bpr = b_proj.astype(_F32).reshape(1, d)
    return wfc_t, bfc, wpr_t, bpr


@functools.partial(jax.jit, static_argnames=("tile_m", "tile_h"))
def suq_transformer_mlp_diag_prepared(x_mean, x_var, wfc_t, bfc, wpr_t, bpr,
                                      *, tile_m=512, tile_h=512):
    """x_mean, x_var: [B, T, D].  Prepared weights from prepare_suq_mlp_params.
    Returns (out_mean, out_var): [B, T, D] float32."""
    b, t, d = x_mean.shape
    h_pad = wfc_t.shape[1]
    m = b * t

    tm, th, vmem_limit = _plan_tiles(m, d, h_pad, tile_m, tile_h)
    m_pad = _round_up(m, tm)

    xm2 = x_mean.reshape(m, d).astype(_BF16)
    xv2 = x_var.reshape(m, d).astype(_BF16)
    if m_pad != m:                       # pad the row tail only when needed
        xm2 = jnp.pad(xm2, ((0, m_pad - m), (0, 0)))
        xv2 = jnp.pad(xv2, ((0, m_pad - m), (0, 0)))

    grid = (m_pad // tm, h_pad // th)    # M tiles parallel, H (reduction) last

    out_mean, out_var = pl.pallas_call(
        _suq_mlp_kernel,
        out_shape=(jax.ShapeDtypeStruct((m_pad, d), _F32),
                   jax.ShapeDtypeStruct((m_pad, d), _F32)),
        grid_spec=pltpu.PrefetchScalarGridSpec(
            num_scalar_prefetch=0,
            grid=grid,
            in_specs=[
                pl.BlockSpec((tm, d), lambda i, h: (i, 0)),    # x_mean rows
                pl.BlockSpec((tm, d), lambda i, h: (i, 0)),    # x_var rows
                pl.BlockSpec((d, th), lambda i, h: (0, h)),    # W_fc^T tile
                pl.BlockSpec((1, th), lambda i, h: (0, h)),    # b_fc tile
                pl.BlockSpec((th, d), lambda i, h: (h, 0)),    # W_proj^T tile
                pl.BlockSpec((1, d), lambda i, h: (0, 0)),     # b_proj
            ],
            out_specs=[
                pl.BlockSpec((tm, d), lambda i, h: (i, 0)),
                pl.BlockSpec((tm, d), lambda i, h: (i, 0)),
            ],
        ),
        compiler_params=pltpu.CompilerParams(
            dimension_semantics=("parallel", "arbitrary"),
            vmem_limit_bytes=vmem_limit),
    )(xm2, xv2, wfc_t, bfc, wpr_t, bpr)

    if m_pad != m:
        out_mean = out_mean[:m]
        out_var = out_var[:m]
    return out_mean.reshape(b, t, d), out_var.reshape(b, t, d)


def suq_transformer_mlp_diag(x_mean, x_var, w_fc, b_fc, w_proj, b_proj,
                             *, tile_m=512, tile_h=512):
    """Convenience wrapper that prepares weights per call.  Prefer calling
    prepare_suq_mlp_params once and reusing the result for repeated layers."""
    params = prepare_suq_mlp_params(w_fc, b_fc, w_proj, b_proj)
    return suq_transformer_mlp_diag_prepared(x_mean, x_var, *params,
                                             tile_m=tile_m, tile_h=tile_h)


# ----------------------------- references --------------------------------- #

def _mm(a, b):
    return jnp.dot(a, b, precision=jax.lax.Precision.HIGHEST)


def _reference(x_mean, x_var, w_fc, b_fc, w_proj, b_proj, quantized=False):
    """Pure-JAX reference mirroring the PyTorch forward.  quantized=True applies
    the same bf16 casts as the kernel for a tight numerical cross-check."""
    if quantized:
        q = lambda a: a.astype(jnp.bfloat16).astype(jnp.float32)
    else:
        q = lambda a: a
    xm, xv = q(x_mean), q(x_var)
    wfc, wpr = q(w_fc), q(w_proj)
    h_mean = _mm(xm, wfc.T) + b_fc
    h_var = _mm(xv, q(wfc ** 2).T)
    cdf = 0.5 * (1.0 + jax.lax.erf(h_mean * INV_SQRT2))
    a_mean = h_mean * cdf
    pdf = jnp.exp(-0.5 * h_mean ** 2) * INV_SQRT_2PI
    nabla = cdf + h_mean * pdf
    a_var = nabla ** 2 * h_var
    o_mean = _mm(q(a_mean), wpr.T) + b_proj
    o_var = _mm(q(a_var), q(wpr ** 2).T)
    return o_mean, o_var


if __name__ == "__main__":
    def make_case(key, B, T, D, H):
        k1, k2, k3, k4, k5, k6 = jax.random.split(key, 6)
        x_mean = jax.random.normal(k1, (B, T, D), dtype=jnp.float32)
        x_var = jax.nn.softplus(jax.random.normal(k2, (B, T, D), dtype=jnp.float32))
        w_fc = 0.1 * jax.random.normal(k3, (H, D), dtype=jnp.float32)
        b_fc = 0.1 * jax.random.normal(k4, (H,), dtype=jnp.float32)
        w_proj = 0.1 * jax.random.normal(k5, (D, H), dtype=jnp.float32)
        b_proj = 0.1 * jax.random.normal(k6, (D,), dtype=jnp.float32)
        return x_mean, x_var, w_fc, b_fc, w_proj, b_proj

    def check(out_mean, out_var, args):
        qm, qv = _reference(*args, quantized=True)    # same bf16 rounding as kernel
        fm, fv = _reference(*args, quantized=False)   # full-f32 semantic reference
        assert jnp.allclose(out_mean, qm, atol=5e-3, rtol=5e-3)
        assert jnp.allclose(out_var, qv, atol=5e-3, rtol=5e-3)
        assert jnp.allclose(out_mean, fm, atol=5e-2, rtol=5e-2)
        assert jnp.allclose(out_var, fv, atol=5e-2, rtol=5e-2)

    key_a, key_b = jax.random.split(jax.random.PRNGKey(0))

    # Case 1: GPT-style toy MLP (D=32, H=4*D); single H tile, two row tiles.
    args = make_case(key_a, 2, 8, 32, 128)
    out_mean, out_var = suq_transformer_mlp_diag(*args)
    jax.block_until_ready((out_mean, out_var))
    check(out_mean, out_var, args)

    # Case 2: prepared-params path; exercises M padding (M=14 -> 16) and the
    # H-accumulation path (H=256 split across two 128-wide tiles).
    args = make_case(key_b, 2, 7, 128, 256)
    params = prepare_suq_mlp_params(*args[2:])
    out_mean, out_var = suq_transformer_mlp_diag_prepared(
        args[0], args[1], *params, tile_m=128, tile_h=128)
    jax.block_until_ready((out_mean, out_var))
    check(out_mean, out_var, args)

    print("KERNEL_OK")
</pallas_src>

<mosaic_0001>
module attributes {stable_mosaic.version = 11 : i64} {
  func.func @_suq_mlp_kernel(%arg0: i32, %arg1: i32, %arg2: memref<8x32xbf16, #tpu.memory_space<vmem>>, %arg3: memref<8x32xbf16, #tpu.memory_space<vmem>>, %arg4: memref<32x128xbf16, #tpu.memory_space<vmem>>, %arg5: memref<1x128xf32, #tpu.memory_space<vmem>>, %arg6: memref<128x32xbf16, #tpu.memory_space<vmem>>, %arg7: memref<1x32xf32, #tpu.memory_space<vmem>>, %arg8: memref<8x32xf32, #tpu.memory_space<vmem>>, %arg9: memref<8x32xf32, #tpu.memory_space<vmem>>) attributes {dimension_semantics = [#tpu.dimension_semantics<parallel>, #tpu.dimension_semantics<arbitrary>], iteration_bounds = array<i64: 2, 1>, scalar_prefetch = 0 : i64, scratch_operands = 0 : i64, tpu.core_type = #tpu.core_type<tc>, window_params = [{transform_indices = @transform_0, window_bounds = array<i64: 8, 32>}, {transform_indices = @transform_1, window_bounds = array<i64: 8, 32>}, {transform_indices = @transform_2, window_bounds = array<i64: 32, 128>}, {transform_indices = @transform_3, window_bounds = array<i64: 1, 128>}, {transform_indices = @transform_4, window_bounds = array<i64: 128, 32>}, {pipeline_mode = #tpu.pipeline_mode<synchronous>, transform_indices = @transform_5, window_bounds = array<i64: 1, 32>}, {transform_indices = @transform_6, window_bounds = array<i64: 8, 32>}, {transform_indices = @transform_7, window_bounds = array<i64: 8, 32>}]} {
    %c0_i32 = arith.constant 0 : i32
    %0 = arith.cmpi eq, %arg1, %c0_i32 : i32
    %1 = arith.extui %0 : i1 to i32
    %c0_i32_0 = arith.constant 0 : i32
    %2 = arith.cmpi ne, %1, %c0_i32_0 : i32
    scf.if %2 {
      %c0_26 = arith.constant 0 : index
      %c0_27 = arith.constant 0 : index
      %42 = vector.load %arg7[%c0_26, %c0_27] : memref<1x32xf32, #tpu.memory_space<vmem>>, vector<1x32xf32>
      %43 = vector.shape_cast %42 : vector<1x32xf32> to vector<1x32xf32>
      %44 = vector.broadcast %43 : vector<1x32xf32> to vector<8x32xf32>
      %c0_28 = arith.constant 0 : index
      %c0_29 = arith.constant 0 : index
      %45 = vector.load %arg8[%c0_28, %c0_29] : memref<8x32xf32, #tpu.memory_space<vmem>>, vector<8x32xf32>
      tpu.vector_store %arg8[%c0_28, %c0_29], %44 {strides = array<i32>} : memref<8x32xf32, #tpu.memory_space<vmem>>, vector<8x32xf32>,
      %cst_30 = arith.constant 0.000000e+00 : f32
      %46 = vector.broadcast %cst_30 : f32 to vector<8x32xf32>
      %c0_31 = arith.constant 0 : index
      %c0_32 = arith.constant 0 : index
      %47 = vector.load %arg9[%c0_31, %c0_32] : memref<8x32xf32, #tpu.memory_space<vmem>>, vector<8x32xf32>
      tpu.vector_store %arg9[%c0_31, %c0_32], %46 {strides = array<i32>} : memref<8x32xf32, #tpu.memory_space<vmem>>, vector<8x32xf32>,
    } else {
    }
    %c0 = arith.constant 0 : index
    %c0_1 = arith.constant 0 : index
    %3 = vector.load %arg2[%c0, %c0_1] : memref<8x32xbf16, #tpu.memory_space<vmem>>, vector<8x32xbf16>
    %c0_2 = arith.constant 0 : index
    %c0_3 = arith.constant 0 : index
    %4 = vector.load %arg3[%c0_2, %c0_3] : memref<8x32xbf16, #tpu.memory_space<vmem>>, vector<8x32xbf16>
    %c0_4 = arith.constant 0 : index
    %c0_5 = arith.constant 0 : index
    %5 = vector.load %arg4[%c0_4, %c0_5] : memref<32x128xbf16, #tpu.memory_space<vmem>>, vector<32x128xbf16>
    %cst = arith.constant dense<0.000000e+00> : vector<8x128xf32>
    %6 = tpu.matmul %3, %5, %cst {dimension_numbers = #tpu.dot_dimension_numbers<[1], [0], [0], [1], [0, 0, 1, 1], [], []>} : vector<8x32xbf16>, vector<32x128xbf16>, vector<8x128xf32> -> vector<8x128xf32>
    %c0_6 = arith.constant 0 : index
    %c0_7 = arith.constant 0 : index
    %7 = vector.load %arg5[%c0_6, %c0_7] : memref<1x128xf32, #tpu.memory_space<vmem>>, vector<1x128xf32>
    %8 = vector.broadcast %7 : vector<1x128xf32> to vector<8x128xf32>
    %9 = arith.addf %6, %8 : vector<8x128xf32>
    %10 = arith.mulf %5, %5 : vector<32x128xbf16>
    %cst_8 = arith.constant dense<0.000000e+00> : vector<8x128xf32>
    %11 = tpu.matmul %4, %10, %cst_8 {dimension_numbers = #tpu.dot_dimension_numbers<[1], [0], [0], [1], [0, 0, 1, 1], [], []>} : vector<8x32xbf16>, vector<32x128xbf16>, vector<8x128xf32> -> vector<8x128xf32>
    %cst_9 = arith.constant 0.707106769 : f32
    %12 = vector.broadcast %cst_9 : f32 to vector<8x128xf32>
    %13 = arith.mulf %9, %12 : vector<8x128xf32>
    %14 = math.erf %13 : vector<8x128xf32>
    %cst_10 = arith.constant 1.000000e+00 : f32
    %15 = vector.broadcast %cst_10 : f32 to vector<8x128xf32>
    %16 = arith.addf %15, %14 : vector<8x128xf32>
    %cst_11 = arith.constant 5.000000e-01 : f32
    %17 = vector.broadcast %cst_11 : f32 to vector<8x128xf32>
    %18 = arith.mulf %17, %16 : vector<8x128xf32>
    %19 = arith.mulf %9, %18 : vector<8x128xf32>
    %cst_12 = arith.constant -5.000000e-01 : f32
    %20 = vector.broadcast %cst_12 : f32 to vector<8x128xf32>
    %21 = arith.mulf %20, %9 : vector<8x128xf32>
    %22 = arith.mulf %21, %9 : vector<8x128xf32>
    %23 = math.exp %22 : vector<8x128xf32>
    %cst_13 = arith.constant 0.398942292 : f32
    %24 = vector.broadcast %cst_13 : f32 to vector<8x128xf32>
    %25 = arith.mulf %23, %24 : vector<8x128xf32>
    %26 = arith.mulf %9, %25 : vector<8x128xf32>
    %27 = arith.addf %18, %26 : vector<8x128xf32>
    %28 = arith.mulf %27, %27 : vector<8x128xf32>
    %29 = arith.mulf %28, %11 : vector<8x128xf32>
    %c0_14 = arith.constant 0 : index
    %c0_15 = arith.constant 0 : index
    %30 = vector.load %arg6[%c0_14, %c0_15] : memref<128x32xbf16, #tpu.memory_space<vmem>>, vector<128x32xbf16>
    %c0_16 = arith.constant 0 : index
    %c0_17 = arith.constant 0 : index
    %31 = vector.load %arg8[%c0_16, %c0_17] : memref<8x32xf32, #tpu.memory_space<vmem>>, vector<8x32xf32>
    %32 = arith.truncf %19 : vector<8x128xf32> to vector<8x128xbf16>
    %cst_18 = arith.constant dense<0.000000e+00> : vector<8x32xf32>
    %33 = tpu.matmul %32, %30, %cst_18 {dimension_numbers = #tpu.dot_dimension_numbers<[1], [0], [0], [1], [0, 0, 1, 1], [], []>} : vector<8x128xbf16>, vector<128x32xbf16>, vector<8x32xf32> -> vector<8x32xf32>
    %34 = arith.addf %31, %33 : vector<8x32xf32>
    %c0_19 = arith.constant 0 : index
    %c0_20 = arith.constant 0 : index
    %35 = vector.load %arg8[%c0_19, %c0_20] : memref<8x32xf32, #tpu.memory_space<vmem>>, vector<8x32xf32>
    tpu.vector_store %arg8[%c0_19, %c0_20], %34 {strides = array<i32>} : memref<8x32xf32, #tpu.memory_space<vmem>>, vector<8x32xf32>,
    %c0_21 = arith.constant 0 : index
    %c0_22 = arith.constant 0 : index
    %36 = vector.load %arg9[%c0_21, %c0_22] : memref<8x32xf32, #tpu.memory_space<vmem>>, vector<8x32xf32>
    %37 = arith.truncf %29 : vector<8x128xf32> to vector<8x128xbf16>
    %38 = arith.mulf %30, %30 : vector<128x32xbf16>
    %cst_23 = arith.constant dense<0.000000e+00> : vector<8x32xf32>
    %39 = tpu.matmul %37, %38, %cst_23 {dimension_numbers = #tpu.dot_dimension_numbers<[1], [0], [0], [1], [0, 0, 1, 1], [], []>} : vector<8x128xbf16>, vector<128x32xbf16>, vector<8x32xf32> -> vector<8x32xf32>
    %40 = arith.addf %36, %39 : vector<8x32xf32>
    %c0_24 = arith.constant 0 : index
    %c0_25 = arith.constant 0 : index
    %41 = vector.load %arg9[%c0_24, %c0_25] : memref<8x32xf32, #tpu.memory_space<vmem>>, vector<8x32xf32>
    tpu.vector_store %arg9[%c0_24, %c0_25], %40 {strides = array<i32>} : memref<8x32xf32, #tpu.memory_space<vmem>>, vector<8x32xf32>,
    return
  }
  func.func @transform_0(%arg0: i32, %arg1: i32) -> (i32, i32) {
    %c0_i32 = arith.constant 0 : i32
    %c0_i32_0 = arith.constant 0 : i32
    return %arg0, %c0_i32 : i32, i32
  }
  func.func @transform_1(%arg0: i32, %arg1: i32) -> (i32, i32) {
    %c0_i32 = arith.constant 0 : i32
    %c0_i32_0 = arith.constant 0 : i32
    return %arg0, %c0_i32 : i32, i32
  }
  func.func @transform_2(%arg0: i32, %arg1: i32) -> (i32, i32) {
    %c0_i32 = arith.constant 0 : i32
    %c0_i32_0 = arith.constant 0 : i32
    return %c0_i32, %arg1 : i32, i32
  }
  func.func @transform_3(%arg0: i32, %arg1: i32) -> (i32, i32) {
    %c0_i32 = arith.constant 0 : i32
    %c0_i32_0 = arith.constant 0 : i32
    return %c0_i32, %arg1 : i32, i32
  }
  func.func @transform_4(%arg0: i32, %arg1: i32) -> (i32, i32) {
    %c0_i32 = arith.constant 0 : i32
    %c0_i32_0 = arith.constant 0 : i32
    return %arg1, %c0_i32 : i32, i32
  }
  func.func @transform_5(%arg0: i32, %arg1: i32) -> (i32, i32) {
    %c0_i32 = arith.constant 0 : i32
    %c0_i32_0 = arith.constant 0 : i32
    %c0_i32_1 = arith.constant 0 : i32
    return %c0_i32, %c0_i32_0 : i32, i32
  }
  func.func @transform_6(%arg0: i32, %arg1: i32) -> (i32, i32) {
    %c0_i32 = arith.constant 0 : i32
    %c0_i32_0 = arith.constant 0 : i32
    return %arg0, %c0_i32 : i32, i32
  }
  func.func @transform_7(%arg0: i32, %arg1: i32) -> (i32, i32) {
    %c0_i32 = arith.constant 0 : i32
    %c0_i32_0 = arith.constant 0 : i32
    return %arg0, %c0_i32 : i32, i32
  }
}

</mosaic_0001>

<bundles_post_ra>
// kernel: suq_transformer_mlp_diag_prepared.1
= control target key start
LH: loop header
LB: loop body
LE: loop exit
PB: predicated region body
PF: predicated region fallthrough
CT: control target
= control target key end

     0   :  { %s1542_s0 = inlined_call_operand.vmem [shape: bf16[16,32], index: 0, kind: input, shape index: {}]   ;;  %s1543_s1 = inlined_call_operand.vmem [shape: bf16[16,32], index: 1, kind: input, shape index: {}]   ;;  %s1544_s2 = inlined_call_operand.vmem [shape: bf16[32,128], index: 2, kind: input, shape index: {}]   ;;  %s1545_s3 = inlined_call_operand.vmem [shape: f32[1,128], index: 3, kind: input, shape index: {}]   ;;  %s1546_s4 = inlined_call_operand.vmem [shape: bf16[128,32], index: 4, kind: input, shape index: {}]   ;;  %s1547_s5 = inlined_call_operand.vmem [shape: f32[1,32], index: 5, kind: input, shape index: {}]   ;;  %s1548_s6 = inlined_call_operand.hbm [shape: f32[16,32], index: 6, kind: output, shape index: {0}]   ;;  %s1549_s7 = inlined_call_operand.hbm [shape: f32[16,32], index: 7, kind: output, shape index: {1}]  }
   0x1   :  { %1551 = sst [smem:[#allocation8_spill]] %s1542_s0 }
   0x2   :  { %13 = vsyncpa [#allocation3], 0 }
   0x3   :  { %15 = vsyncpa [#allocation3 + $0x1], 0 }
   0x4   :  { %16 = vsyncpa [#allocation5], 0 }
   0x5   :  { %18 = vsyncpa [#allocation5 + $0x1], 0  ;;  %s1275_s24 = smov 0   ;;  %s1277_s25 = smov 0  }
   0x6   :  { %s1279_s26 = smov 0   ;;  %s1281_s27 = smov 0  }
   0x7   :  { %s1283_s28 = smov 0   ;;  %s1285_s29 = smov 0  }
   0x8 LB: > { %s925_s30 = sadd.s32 4294967295, %s1229_s29   ;;  %s926_s8 = sadd.s32 4294967294, %s1229_s29   ;;  %s1229_s29 = sphi %s1285_s29, %s24_s29   ;;  %s1225_s28 = sphi %s1283_s28, %s1560_s28   ;;  %s1221_s27 = sphi %s1281_s27, %s1559_s27   ;;  %s1217_s26 = sphi %s1279_s26, %s1558_s26   ;;  %s1213_s25 = sphi %s1277_s25, %s1557_s25   ;;  %s1209_s24 = sphi %s1275_s24, %s1556_s24  }
   0x9   : > { %s36_s9 = sadd.s32 1, %s1225_s28  ;;  %s194_s10 = sadd.s32 1, %s1217_s26 }
   0xa   : > { %p38_p0 = scmp.ge.s32.totalorder %s36_s9, 2  ;;  %p204_p1 = scmp.ne.s32.totalorder %s1217_s26, %s1213_s25 }
   0xb   : > { %p205_p2 = scmp.eq.s32.totalorder %s925_s30, 1  ;;  %p210_p3 = scmp.ne.s32.totalorder %s1213_s25, %s1209_s24 }
   0xc   : > { %s1562_s9 = smov (%p38_p0, %s36_s9), 0  ;;  %p211_p5 = scmp.eq.s32.totalorder %s926_s8, 1 }
   0xd   : > { %p1315_p4 = por %p205_p2, %p204_p1  ;;  %s191_s12 = ssub.s32 %s1225_s28, %s1562_s9 }
   0xe   : > { %p932_p6 = scmp.ge.s32.totalorder %s1229_s29, 1  ;;  %p192_p7 = scmp.eq.s32.totalorder %s191_s12, 0 }
   0xf   : > { %p1322_p8 = por %p211_p5, %p210_p3  ;;  %p294_p9 = scmp.lt.s32.totalorder %s1229_s29, 3 }
  0x10   : > { %s1328_s14 = scalar_select %p192_p7, %s1217_s26, %s194_s10  }
  0x11   : > { %p295_p10 = pnand %p932_p6, %p294_p9 }
  0x12   : > { %p346_p11 = scmp.lt.s32.totalorder (!%p295_p10), %s1221_s27, 1  ;;  %s1554_s0 = sld [smem:[#allocation8_spill]] (!%p295_p10) }
  0x13   : > { %298 = sbr.rel (%p295_p10) target bundleno = 485 (0x1e5), region = 44  ;;  %s1429_s30 = sand.u32 (!%p295_p10), 1, %s1213_s25  }
  0x14   : > { %s933_s12 = sshll.u32 (!%p295_p10), %s1429_s30, 3  ;;  %s1550_s19 = sshll.u32 (!%p295_p10), %s1221_s27, 7 }
  0x15   : > { %s741_s8 = scalar_lea.sflag (!%p295_p10), [#allocation3], %s1429_s30 }
  0x18   : > { %v386_v0 = vld [vmem:[%s1544_s2 + $0x8] sm:$0xf]  ;;  %v387_v1 = vld [vmem:[%s1544_s2 + $0xc] sm:$0xf]  ;;  %v1231_v2 = vmov 0.0   ;;  %vm1232_vm0 = vmmov 0  }
  0x19   : > { %991 = vmatprep.subr.bf16.mxu0 %v1231_v2  ;;  %v940_v3 = vcombine.low %v386_v0, %v387_v1  ;;  %v384_v4 = vld [vmem:[%s1544_s2] sm:$0xf]  ;;  %v385_v5 = vld [vmem:[%s1544_s2 + $0x4] sm:$0xf]  ;;  %995 = vmatprep.mubr.msk.bf16.mxu0 %vm1232_vm0, %v1231_v2  ;;  %v453_v6 = vmul.bf16 %v386_v0, %v386_v0  ;;  %v454_v7 = vmul.bf16 %v387_v1, %v387_v1  ;;  %s347_s23 = scalar_select %p346_p11, %s1221_s27, 1  ;;  %vm379_vm1 = vcmask 261120  }
  0x1a   : > { %999 = vmatprep.subr.bf16.mxu1 %v1231_v2  ;;  %v451_v8 = vmul.bf16 %v384_v4, %v384_v4  ;;  %v452_v9 = vmul.bf16 %v385_v5, %v385_v5  ;;  %1003 = vmatprep.mubr.msk.bf16.mxu1 %vm1232_vm0, %v1231_v2  ;;  %v939_v10 = vcombine.low %v384_v4, %v385_v5  ;;  %v538_v12 = vld [vmem:[%s1546_s4 + $0x38] sm:$0xf]  ;;  %v539_v13 = vld [vmem:[%s1546_s4 + $0x3c] sm:$0xf]  ;;  %v536_v18 = vld [vmem:[%s1546_s4 + $0x30] sm:$0xf] }
  0x1b   : > { %992 = vmatpush3.bf16.msra.mxu0 %v940_v3  ;;  %v943_v11 = vcombine.low %v453_v6, %v454_v7  ;;  %s935_s15 = sshll.u32 %s347_s23, 2  ;;  %v952_v16 = vcombine.low %v538_v12, %v539_v13  ;;  %v537_v19 = vld [vmem:[%s1546_s4 + $0x34] sm:$0xf]  ;;  %v648_v21 = vmul.bf16 %v538_v12, %v538_v12  ;;  %v649_v22 = vmul.bf16 %v539_v13, %v539_v13  ;;  %v534_v23 = vld [vmem:[%s1546_s4 + $0x28] sm:$0xf]  ;;  %s1459_s23 = scalar_lea.hbm %s1548_s6, %s1550_s19 }
  0x1c   : > { %993 = vmatprep.subr.bf16.mxu0 %v1231_v2  ;;  %v942_v14 = vcombine.low %v451_v8, %v452_v9  ;;  %s349_s18 = scalar_lea.vmem %s1554_s0, %s935_s15  ;;  %s353_s21 = scalar_lea.vmem %s1543_s1, %s935_s15  ;;  %v951_v20 = vcombine.low %v536_v18, %v537_v19  ;;  %v535_v24 = vld [vmem:[%s1546_s4 + $0x2c] sm:$0xf]  ;;  %v646_v27 = vmul.bf16 %v536_v18, %v536_v18  ;;  %v647_v28 = vmul.bf16 %v537_v19, %v537_v19  ;;  %v532_v29 = vld [vmem:[%s1546_s4 + $0x20] sm:$0xf]  ;;  %v533_v30 = vld [vmem:[%s1546_s4 + $0x24] sm:$0xf] }
  0x1d   : > { %1000 = vmatpush3.bf16.msra.mxu1 %v943_v11  ;;  %v382_v15 = vld [vmem:[%s349_s18] sm:$0xf]  ;;  %v950_v25 = vcombine.low %v534_v23, %v535_v24  ;;  %v960_v26 = vcombine.low %v648_v21, %v649_v22  ;;  %v949_v31 = vcombine.low %v532_v29, %v533_v30  ;;  %v530_v33 = vld [vmem:[%s1546_s4 + $0x18] sm:$0xf]  ;;  %v531_v34 = vld [vmem:[%s1546_s4 + $0x1c] sm:$0xf]  ;;  %v644_v35 = vmul.bf16 %v534_v23, %v534_v23 }
  0x1e   : > { %1001 = vmatprep.subr.bf16.mxu1 %v1231_v2  ;;  %v383_v17 = vld [vmem:[%s353_s21] sm:$0xf]  ;;  %v959_v32 = vcombine.low %v646_v27, %v647_v28  ;;  %v645_v36 = vmul.bf16 %v535_v24, %v535_v24  ;;  %v948_v37 = vcombine.low %v530_v33, %v531_v34  ;;  %v642_v39 = vmul.bf16 %v532_v29, %v532_v29  ;;  %v528_v41 = vld [vmem:[%s1546_s4 + $0x10] sm:$0xf]  ;;  %v529_v42 = vld [vmem:[%s1546_s4 + $0x14] sm:$0xf] }
  0x1f   : > { %994 = vmatpush3.bf16.msra.mxu0 %v939_v10  ;;  %v643_v40 = vmul.bf16 %v533_v30, %v533_v30  ;;  %v640_v43 = vmul.bf16 %v530_v33, %v530_v33  ;;  %v947_v44 = vcombine.low %v528_v41, %v529_v42  ;;  %v641_v46 = vmul.bf16 %v531_v34, %v531_v34  ;;  %v526_v47 = vld [vmem:[%s1546_s4 + $0x8] sm:$0xf]  ;;  %v527_v48 = vld [vmem:[%s1546_s4 + $0xc] sm:$0xf]  ;;  %v524_v53 = vld [vmem:[%s1546_s4] sm:$0xf] }
  0x20   : > { %1007 = vmatprep.subr.bf16.mxu0 %v1231_v2  ;;  %v958_v38 = vcombine.low %v644_v35, %v645_v36  ;;  %v946_v49 = vcombine.low %v526_v47, %v527_v48  ;;  %v638_v51 = vmul.bf16 %v528_v41, %v528_v41  ;;  %v639_v52 = vmul.bf16 %v529_v42, %v529_v42  ;;  %v525_v54 = vld [vmem:[%s1546_s4 + $0x4] sm:$0xf]  ;;  %v937_v63 = vld [vmem:[%s1547_s5] ss:$0 sm:$0xff]  ;;  %s1437_s15 = scalar_lea.vmem [#allocation2], %s933_s12  ;;  %s1446_s18 = scalar_lea.vmem [#allocation4], %s933_s12 }
  0x21   : > { %1002 = vmatpush3.bf16.msra.mxu1 %v942_v14  ;;  %v957_v45 = vcombine.low %v642_v39, %v643_v40  ;;  %v956_v50 = vcombine.low %v640_v43, %v641_v46  ;;  %v945_v55 = vcombine.low %v524_v53, %v525_v54  ;;  %v636_v57 = vmul.bf16 %v526_v47, %v526_v47  ;;  %v938_v0 = vld [vmem:[%s1545_s3] ss:$0 sm:$0xff]  ;;  %s759_s20 = sshll.u32 %s1437_s15, 4  ;;  %s1233_s12 = smov [#allocation2]   ;;  %s1461_s20 = int_to_ptr.vmem [resolvable:$true] %s759_s20 }
  0x22   : > { %996 = vmatmul.mubr.msk.bf16.vlgmr.msra.gmra.mxu0 %vm379_vm1, %v382_v15  ;;  %1027 = vmatprep.subr.bf16.mxu1 %v1231_v2  ;;  %v955_v56 = vcombine.low %v638_v51, %v639_v52  ;;  %v637_v58 = vmul.bf16 %v527_v48, %v527_v48  ;;  %v634_v60 = vmul.bf16 %v524_v53, %v524_v53  ;;  %s1123_s10 = scalar_lea.vmem %s1461_s20, 128  ;;  %s1127_s16 = sshll.u32 %s1233_s12, 4  ;;  %s1128_s16 = int_to_ptr.vmem [resolvable:$false] %s1127_s16 }
  0x23   : > { %1008 = vmatpush3.bf16.msra.mxu0 %v952_v16  ;;  %1023 = vmatprep.mubr.msk.bf16.mxu0 %vm1232_vm0, %v1231_v2  ;;  %v635_v61 = vmul.bf16 %v525_v54, %v525_v54  ;;  %380 = vst.msk [vmem:[%s1437_s15] sm:$0xff] %vm379_vm1, %v937_v63  ;;  %381 = vst.msk [vmem:[%s1446_s18] sm:$0xff] %vm379_vm1, %v1231_v2  ;;  %p1124_p12 = scmp.ne.s32.totalorder %s1461_s20, %s1123_s10  ;;  %s1129_s17 = scalar_lea.vmem %s1128_s16, 256 }
  0x24   : > { %1004 = vmatmul.mubr.msk.bf16.vlgmr.msra.gmra.mxu1 %vm379_vm1, %v383_v17  ;;  %1009 = vmatprep.subr.bf16.mxu0 %v1231_v2  ;;  %v954_v59 = vcombine.low %v636_v57, %v637_v58  ;;  %p1130_p1 = scmp.lt.s32.totalorder %s1461_s20, %s1128_s16  ;;  %p1131_p2 = scmp.lt.s32.totalorder %s1129_s17, %s1123_s10 }
  0x25   : > { %1043 = vmatprep.mubr.msk.bf16.mxu1 %vm1232_vm0, %v1231_v2  ;;  %1028 = vmatpush3.bf16.msra.mxu1 %v960_v26  ;;  %v953_v62 = vcombine.low %v634_v60, %v635_v61  ;;  %p1125_p13 = pnand %p1124_p12, %p1315_p4 }
  0x26   : > { %1029 = vmatprep.subr.bf16.mxu1 %v1231_v2  ;;  %p1132_p3 = por %p1131_p2, %p1130_p1 }
  0x27   : > { %1010 = vmatpush3.bf16.msra.mxu0 %v951_v20  ;;  %p1126_p0 = pneg %p1125_p13 }
  0x28   : > { %1011 = vmatprep.subr.bf16.mxu0 %v1231_v2 }
  0x29   : > { %1030 = vmatpush3.bf16.msra.mxu1 %v959_v32  ;;  %p1133_p5 = pnand %p1132_p3, %p1126_p0 }
  0x2a   : > { %1031 = vmatprep.subr.bf16.mxu1 %v1231_v2  ;;  %v540_v27 = vld [vmem:[%s1437_s15] sm:$0xff] }
  0x2b   : > { %1012 = vmatpush3.bf16.msra.mxu0 %v950_v25 }
  0x2c   : > { %1013 = vmatprep.subr.bf16.mxu0 %v1231_v2 }
  0x2d   : > { %1032 = vmatpush3.bf16.msra.mxu1 %v958_v38 }
  0x2e   : > { %1033 = vmatprep.subr.bf16.mxu1 %v1231_v2 }
  0x2f   : > { %1014 = vmatpush3.bf16.msra.mxu0 %v949_v31 }
  0x30   : > { %1015 = vmatprep.subr.bf16.mxu0 %v1231_v2 }
  0x31   : > { %1034 = vmatpush3.bf16.msra.mxu1 %v957_v45 }
  0x32   : > { %1035 = vmatprep.subr.bf16.mxu1 %v1231_v2 }
  0x33   : > { %1016 = vmatpush3.bf16.msra.mxu0 %v948_v37 }
  0x34   : > { %1017 = vmatprep.subr.bf16.mxu0 %v1231_v2 }
  0x35   : > { %1036 = vmatpush3.bf16.msra.mxu1 %v956_v50 }
  0x36   : > { %1037 = vmatprep.subr.bf16.mxu1 %v1231_v2 }
  0x37   : > { %1018 = vmatpush3.bf16.msra.mxu0 %v947_v44 }
  0x38   : > { %1019 = vmatprep.subr.bf16.mxu0 %v1231_v2 }
  0x39   : > { %1038 = vmatpush3.bf16.msra.mxu1 %v955_v56 }
  0x3a   : > { %1039 = vmatprep.subr.bf16.mxu1 %v1231_v2 }
  0x3b   : > { %1020 = vmatpush3.bf16.msra.mxu0 %v946_v49 }
  0x3c   : > { %1021 = vmatprep.subr.bf16.mxu0 %v1231_v2 }
  0x3d   : > { %1040 = vmatpush3.bf16.msra.mxu1 %v954_v59 }
  0x3e   : > { %1041 = vmatprep.subr.bf16.mxu1 %v1231_v2 }
  0x3f   : > { %1022 = vmatpush3.bf16.msra.mxu0 %v945_v55 }
  0x41   : > { %1042 = vmatpush3.bf16.msra.mxu1 %v953_v62 }
  0xe2   : > { %v445_v1 = vpop.f32.mrf.mxu0 }
  0xe3   : > { %v446_v3 = vadd.f32 %v938_v0, %v445_v1 }
  0xe4   : > { %v997_v4 = vpop.f32.mrf.mxu0  ;;  %v504_v5 = vpop.f32.mrf.mxu1 }
  0xe5   : > { %v515_v6 = vmul.f32 -0.5, %v446_v3  ;;  %v510_v7 = vmul.f32 0.70710677, %v446_v3 }
  0xe6   : > { %v448_v8 = vpop.f32.mrf.mxu0  ;;  %v1005_v9 = vpop.f32.mrf.mxu1 }
  0xe7   : > { %1119 = verf.f32 %v510_v7  ;;  %v516_v10 = vmul.f32 %v515_v6, %v446_v3 }
  0xe8   : > { %v998_v11 = vpop.f32.mrf.mxu0  ;;  %v507_v12 = vpop.f32.mrf.mxu1 }
  0xe9   : > { %v517_v13 = vmul.f32 1.442695, %v516_v10 }
  0xea   : > { %v1006_v14 = vpop.f32.mrf.mxu1 }
  0xeb   : > { %1121 = vpow2.f32 %v517_v13 }
  0xf4   : > { %v1120_v15 = vpop.eup %1119 }
  0xf5   : > { %v512_v16 = vadd.f32 1.0, %v1120_v15 }
  0xf7   : > { %v513_v17 = vmul.f32 0.5, %v512_v16 }
  0xf8   : > { %v1122_v18 = vpop.eup %1121 }
  0xf9   : > { %v514_v19 = vmul.f32 %v513_v17, %v446_v3  ;;  %v519_v20 = vmul.f32 0.3989423, %v1122_v18 }
  0xfb   : > { %v520_v21 = vmul.f32 %v519_v20, %v446_v3  ;;  %v541_v22 = vpack.c.bf16 %v514_v19, %v514_v19 }
  0xfd   : > { %v521_v23 = vadd.f32 %v520_v21, %v513_v17  ;;  %1024 = vmatmul.mubr.bf16.vlgmr.msra.gmra.mxu0 %v541_v22 }
  0xff   : > { %v522_v24 = vmul.f32 %v521_v23, %v521_v23 }
 0x101   : > { %v523_v25 = vmul.f32 %v522_v24, %v504_v5 }
 0x103   : > { %v633_v26 = vpack.c.bf16 %v523_v25, %v523_v25 }
 0x105   : > { %1044 = vmatmul.mubr.bf16.vlgmr.msra.gmra.mxu1 %v633_v26 }
 0x1bd   : > { %v624_v28 = vpop.f32.mrf.mxu0 }
 0x1be   : > { %v630_v29 = vadd.f32 %v624_v28, %v540_v27 }
 0x1bf   : > { %v1025_v30 = vpop.f32.mrf.mxu0 }
 0x1c0   : > { %631 = vst.msk [vmem:[%s1437_s15] sm:$0xff] %vm379_vm1, %v630_v29 }
 0x1c1   : > { %v627_v2 = vpop.f32.mrf.mxu0 }
 0x1c2   : > { %1136 = shalt.err (!%p1133_p5)
}
 0x1c3   : > { %s1137_s15 = scalar_lea.hbm %s1459_s23, 128  ;;  %s1141_s12 = scalar_lea.hbm %s1548_s6, 256 }
 0x1c4   : > { %p1138_p6 = scmp.ne.s32.totalorder %s1459_s23, %s1137_s15  ;;  %p1142_p10 = scmp.lt.s32.totalorder %s1459_s23, %s1548_s6 }
 0x1c5   : > { %p1143_p11 = scmp.lt.s32.totalorder %s1141_s12, %s1137_s15 }
 0x1c6   : > { %p1139_p7 = pnand %p1138_p6, %p1315_p4 }
 0x1c7   : > { %p1144_p12 = por %p1143_p11, %p1142_p10 }
 0x1c8   : > { %p1140_p9 = pneg %p1139_p7 }
 0x1ca   : > { %p1145_p13 = pnand %p1144_p12, %p1140_p9 }
 0x1cc   : > { %1148 = shalt.err (!%p1145_p13)
}
 0x1cd   : > { %1047 = dma.vmem_to_hbm [thread:$0]  (%p1315_p4), %s1461_s20, 128, %s1459_s23, %s741_s8   ;;  %v1026_v31 = vpop.f32.mrf.mxu0  ;;  %v632_v32 = vld [vmem:[%s1446_s18] sm:$0xff]  ;;  %v732_v33 = vpop.f32.mrf.mxu1 }
 0x1ce   : > { %s772_s10 = sshll.u32 %s1446_s18, 4  ;;  %v738_v34 = vadd.f32 %v732_v33, %v632_v32  ;;  %s1555_s0 = sshll.u32 %s1221_s27, 7  ;;  %s1495_s10 = int_to_ptr.vmem [resolvable:$true] %s772_s10 }
 0x1cf   : > { %s1493_s17 = scalar_lea.hbm %s1549_s7, %s1555_s0  ;;  %v1045_v35 = vpop.f32.mrf.mxu1  ;;  %s746_s20 = scalar_lea.sflag [#allocation5], %s1429_s30 }
 0x1d0   : > { %739 = vst.msk [vmem:[%s1446_s18] sm:$0xff] %vm379_vm1, %v738_v34  ;;  %s1149_s23 = scalar_lea.vmem %s1495_s10, 128  ;;  %s1234_s27 = smov [#allocation4]  }
 0x1d1   : > { %v735_v36 = vpop.f32.mrf.mxu1  ;;  %p1150_p0 = scmp.ne.s32.totalorder %s1495_s10, %s1149_s23  ;;  %s1153_s8 = sshll.u32 %s1234_s27, 4  ;;  %s1154_s8 = int_to_ptr.vmem [resolvable:$false] %s1153_s8 }
 0x1d2   : > { %s1155_s15 = scalar_lea.vmem %s1154_s8, 256  ;;  %p1156_p3 = scmp.lt.s32.totalorder %s1495_s10, %s1154_s8 }
 0x1d3   : > { %p1151_p1 = pnand %p1150_p0, %p1315_p4  ;;  %p1157_p5 = scmp.lt.s32.totalorder %s1155_s15, %s1149_s23 }
 0x1d5   : > { %p1152_p2 = pneg %p1151_p1  ;;  %p1158_p6 = por %p1157_p5, %p1156_p3 }
 0x1d7   : > { %p1159_p7 = pnand %p1158_p6, %p1152_p2 }
 0x1d9   : > { %1162 = shalt.err (!%p1159_p7)
}
 0x1da   : > { %s1163_s18 = scalar_lea.hbm %s1493_s17, 128  ;;  %s1167_s22 = scalar_lea.hbm %s1549_s7, 256 }
 0x1db   : > { %p1164_p9 = scmp.ne.s32.totalorder %s1493_s17, %s1163_s18  ;;  %p1168_p12 = scmp.lt.s32.totalorder %s1493_s17, %s1549_s7 }
 0x1dc   : > { %p1169_p13 = scmp.lt.s32.totalorder %s1167_s22, %s1163_s18 }
 0x1dd   : > { %p1165_p10 = pnand %p1164_p9, %p1315_p4 }
 0x1de   : > { %p1170_p0 = por %p1169_p13, %p1168_p12 }
 0x1df   : > { %p1166_p11 = pneg %p1165_p10 }
 0x1e1   : > { %p1171_p1 = pnand %p1170_p0, %p1166_p11 }
 0x1e3   : > { %1174 = shalt.err (!%p1171_p1)
}
 0x1e4   : > { %1048 = dma.vmem_to_hbm [thread:$0]  (%p1315_p4), %s1495_s10, 128, %s1493_s17, %s746_s20   ;;  %v1046_v37 = vpop.f32.mrf.mxu1 }
 0x1e5 PF: > { %p1058_p2 = scmp.ge.s32.totalorder %s1229_s29, 2  ;;  %s784_s19 = sand.u32 1, %s1209_s24  }
 0x1e6   : > { %s785_s16 = scalar_lea.sflag [#allocation3], %s784_s19 }
 0x1e7   : > { %p1052_p3 = pnand %p1058_p2, %p1322_p8 }
 0x1e9   : > { %p1053_p5 = pneg %p1052_p3 }
 0x1eb   : > { %1200 = dma.done.wait (%p1053_p5), %s785_s16, 128  }
 0x1ec   : > { %1202 = vsyncadd (%p1053_p5), %s785_s16, 4294967168  ;;  %s794_s23 = scalar_lea.sflag [#allocation5], %s784_s19 }
 0x1ed   : > { %1204 = dma.done.wait (%p1053_p5), %s794_s23, 128  }
 0x1ee   : > { %1206 = vsyncadd (%p1053_p5), %s794_s23, 4294967168  ;;  %s24_s29 = sadd.s32 1, %s1229_s29   ;;  %s1556_s24 = smov %s1213_s25 }
 0x1ef   : > { %p21_p6 = scmp.ge.s32.totalorder %s24_s29, 4   ;;  %s1557_s25 = smov %s1217_s26 }
 0x1f0   : > { %s1558_s26 = smov %s1328_s14  ;;  %s1559_s27 = smov %s1225_s28 }
 0x1f1   : > { %s1560_s28 = smov %s1562_s9  ;;  %23 = sbr.rel (!%p21_p6) target bundleno = 8 (0x8), region = 112 }
 0x1f6   :  { %799 = vsyncpa [#allocation3], 1 }
 0x1f7   :  { %801 = vsyncpa [#allocation3 + $0x1], 1 }
 0x1f8   :  { %802 = vsyncpa [#allocation5], 1 }
 0x1f9   :  { %804 = vsyncpa [#allocation5 + $0x1], 1 }

</bundles_post_ra>
